<compile_context>
chip_gen: v5e
topology: v5e:2x2
jax: 0.10.0
libtpu: 0.0.40
codegen_flags: <defaults>
</compile_context>

<pallas_src>
import jax
import jax.numpy as jnp
from jax.experimental import pallas as pl
from jax.experimental.pallas import tpu as pltpu


def _round_up(n, m):
    return ((n + m - 1) // m) * m


def _combined_nn_kernel(x_ref,
                        w1_ref, b1_ref,
                        w2_ref, b2_ref,
                        w3_ref, b3_ref,
                        w4_ref, b4_ref,
                        w5_ref, b5_ref,
                        o_ref):
    """Fused MLP forward for one batch tile:
         NonTextNN: relu(x@W1+b1) -> relu(@W2+b2) -> relu(@W3+b3) -> dropout(id)
         Head:      relu(@W4+b4) -> @W5+b5 -> dropout(id)
       Weights arrive pre-cast to bf16; dots accumulate in f32 on the MXU,
       bias-add / ReLU stay f32 on the VPU.
    """
    def dense(h_bf16, w_ref, b_ref):
        return jnp.dot(h_bf16, w_ref[...],
                       preferred_element_type=jnp.float32) + b_ref[...]

    # Cast once per layer (post-ReLU activation), keep epilogue math in f32.
    h = x_ref[...].astype(jnp.bfloat16)                               # (TM, in)
    h = jnp.maximum(dense(h, w1_ref, b1_ref), 0.0).astype(jnp.bfloat16)  # (TM, 128)
    h = jnp.maximum(dense(h, w2_ref, b2_ref), 0.0).astype(jnp.bfloat16)  # (TM, 64)
    h = jnp.maximum(dense(h, w3_ref, b3_ref), 0.0).astype(jnp.bfloat16)  # (TM, 32)
    # TODO(synk): dropout(p=0.2) is identity in eval mode; training-mode RNG
    # masking (pltpu.prng_seed / prng_random_bits) not implemented.
    h = jnp.maximum(dense(h, w4_ref, b4_ref), 0.0).astype(jnp.bfloat16)  # (TM, 32)
    h = dense(h, w5_ref, b5_ref)                                      # (TM, out_dim) f32
    # second dropout is also identity in eval mode.
    o_ref[...] = h.astype(o_ref.dtype)


def prepare_params(params):
    """Hoisted, once-per-model weight prep: bf16 matmul weights, f32 biases."""
    prepped = {}
    for i in range(1, 6):
        prepped[f"w{i}"] = params[f"w{i}"].astype(jnp.bfloat16)
        prepped[f"b{i}"] = params[f"b{i}"].astype(jnp.float32)
    return prepped


def _choose_tile(B, block_m, min_steps):
    """Batch tile: multiple of 8, capped at block_m, >= min_steps grid steps
    (keeps v7x megacore busy) and batch-padding waste bounded (<~8 rows/step)."""
    n_steps = max(min_steps, pl.cdiv(B, block_m))
    tm = _round_up(pl.cdiv(B, n_steps), 8)
    return max(tm, 8)


def combined_nn_forward(x, prepped, *, block_m=4096, min_steps=2):
    """x: [B, non_text_input_dim] f32. prepped: output of prepare_params."""
    B, in_dim = x.shape
    out_dim = prepped["w5"].shape[1]

    tm = _choose_tile(B, block_m, min_steps)
    b_pad = _round_up(B, tm)
    x_p = jnp.pad(x, ((0, b_pad - B), (0, 0))) if b_pad != B else x

    flat_args = (x_p,
                 prepped["w1"], prepped["b1"],
                 prepped["w2"], prepped["b2"],
                 prepped["w3"], prepped["b3"],
                 prepped["w4"], prepped["b4"],
                 prepped["w5"], prepped["b5"])

    def resident(arr):
        # Full-array block + constant block index across the batch grid
        # -> weight/bias stays resident in VMEM for all grid steps.
        return pl.BlockSpec(arr.shape, lambda i: (0, 0))

    in_specs = [pl.BlockSpec((tm, in_dim), lambda i: (i, 0))]
    in_specs += [resident(a) for a in flat_args[1:]]

    out = pl.pallas_call(
        _combined_nn_kernel,
        out_shape=jax.ShapeDtypeStruct((b_pad, out_dim), jnp.float32),
        grid=(b_pad // tm,),
        in_specs=in_specs,
        # Last dim == full array extent (< 128 is legal as full-extent block);
        # true-width output avoids padded-column HBM writeback entirely.
        out_specs=pl.BlockSpec((tm, out_dim), lambda i: (i, 0)),
        compiler_params=pltpu.CompilerParams(
            dimension_semantics=("parallel",),          # megacore-shard batch axis
            vmem_limit_bytes=32 * 1024 * 1024),
    )(*flat_args)

    return out[:B] if b_pad != B else out


def init_params(key, non_text_input_dim, output_dim):
    """Deterministic init mimicking PyTorch Linear default (uniform +-1/sqrt(fan_in)).
    Weights stored transposed: [in, out]; biases kept 2D [1, out]."""
    dims = [(non_text_input_dim, 128), (128, 64), (64, 32), (32, 32), (32, output_dim)]
    params = {}
    for i, (fan_in, fan_out) in enumerate(dims, start=1):
        key, kw, kb = jax.random.split(key, 3)
        bound = 1.0 / (fan_in ** 0.5)
        params[f"w{i}"] = jax.random.uniform(
            kw, (fan_in, fan_out), jnp.float32, -bound, bound)
        params[f"b{i}"] = jax.random.uniform(
            kb, (1, fan_out), jnp.float32, -bound, bound)
    return params


def reference_forward(x, params):
    """Pure-JAX reference at the same precision as the kernel
    (bf16 matmul inputs, f32 accumulation / bias / ReLU)."""
    def dense(h, w, b):
        return jnp.dot(h.astype(jnp.bfloat16), w.astype(jnp.bfloat16),
                       preferred_element_type=jnp.float32) + b
    h = jnp.maximum(dense(x, params["w1"], params["b1"]), 0.0)
    h = jnp.maximum(dense(h, params["w2"], params["b2"]), 0.0)
    h = jnp.maximum(dense(h, params["w3"], params["b3"]), 0.0)
    h = jnp.maximum(dense(h, params["w4"], params["b4"]), 0.0)
    return dense(h, params["w5"], params["b5"])


if __name__ == "__main__":
    B = 8                     # batch
    NON_TEXT_INPUT_DIM = 16   # non_text_input_dim
    OUTPUT_DIM = 8            # output_dim

    key = jax.random.PRNGKey(0)
    key, kx = jax.random.split(key)
    params = init_params(key, NON_TEXT_INPUT_DIM, OUTPUT_DIM)
    prepped = prepare_params(params)   # bf16 weight cast hoisted out of forward
    x = jax.random.normal(kx, (B, NON_TEXT_INPUT_DIM), jnp.float32)

    out = jax.block_until_ready(combined_nn_forward(x, prepped))
    ref = reference_forward(x, params)
    assert out.shape == (B, OUTPUT_DIM)
    assert jnp.allclose(out, ref, atol=2e-3, rtol=2e-3)

    # Larger, non-multiple batch exercises batch padding + multi-step grid
    # (>= 2 steps -> both v7x TensorCores get work via the parallel axis).
    key, kx2 = jax.random.split(key)
    x2 = jax.random.normal(kx2, (1000, NON_TEXT_INPUT_DIM), jnp.float32)
    out2 = jax.block_until_ready(combined_nn_forward(x2, prepped))
    ref2 = reference_forward(x2, params)
    assert out2.shape == (1000, OUTPUT_DIM)
    assert jnp.allclose(out2, ref2, atol=2e-3, rtol=2e-3)

    # Large batch hits the big-tile (block_m=4096) regime with bounded padding.
    key, kx3 = jax.random.split(key)
    x3 = jax.random.normal(kx3, (8200, NON_TEXT_INPUT_DIM), jnp.float32)
    out3 = jax.block_until_ready(combined_nn_forward(x3, prepped))
    ref3 = reference_forward(x3, params)
    assert out3.shape == (8200, OUTPUT_DIM)
    assert jnp.allclose(out3, ref3, atol=2e-3, rtol=2e-3)

    print("KERNEL_OK")
</pallas_src>

<mosaic_0001>
module attributes {stable_mosaic.version = 11 : i64} {
  func.func @_combined_nn_kernel(%arg0: i32, %arg1: memref<8x16xf32, #tpu.memory_space<vmem>>, %arg2: memref<16x128xbf16, #tpu.memory_space<vmem>>, %arg3: memref<1x128xf32, #tpu.memory_space<vmem>>, %arg4: memref<128x64xbf16, #tpu.memory_space<vmem>>, %arg5: memref<1x64xf32, #tpu.memory_space<vmem>>, %arg6: memref<64x32xbf16, #tpu.memory_space<vmem>>, %arg7: memref<1x32xf32, #tpu.memory_space<vmem>>, %arg8: memref<32x32xbf16, #tpu.memory_space<vmem>>, %arg9: memref<1x32xf32, #tpu.memory_space<vmem>>, %arg10: memref<32x8xbf16, #tpu.memory_space<vmem>>, %arg11: memref<1x8xf32, #tpu.memory_space<vmem>>, %arg12: memref<8x8xf32, #tpu.memory_space<vmem>>) attributes {dimension_semantics = [#tpu.dimension_semantics<parallel>], iteration_bounds = array<i64: 1>, scalar_prefetch = 0 : i64, scratch_operands = 0 : i64, tpu.core_type = #tpu.core_type<tc>, window_params = [{transform_indices = @transform_0, window_bounds = array<i64: 8, 16>}, {pipeline_mode = #tpu.pipeline_mode<synchronous>, transform_indices = @transform_1, window_bounds = array<i64: 16, 128>}, {pipeline_mode = #tpu.pipeline_mode<synchronous>, transform_indices = @transform_2, window_bounds = array<i64: 1, 128>}, {pipeline_mode = #tpu.pipeline_mode<synchronous>, transform_indices = @transform_3, window_bounds = array<i64: 128, 64>}, {pipeline_mode = #tpu.pipeline_mode<synchronous>, transform_indices = @transform_4, window_bounds = array<i64: 1, 64>}, {pipeline_mode = #tpu.pipeline_mode<synchronous>, transform_indices = @transform_5, window_bounds = array<i64: 64, 32>}, {pipeline_mode = #tpu.pipeline_mode<synchronous>, transform_indices = @transform_6, window_bounds = array<i64: 1, 32>}, {pipeline_mode = #tpu.pipeline_mode<synchronous>, transform_indices = @transform_7, window_bounds = array<i64: 32, 32>}, {pipeline_mode = #tpu.pipeline_mode<synchronous>, transform_indices = @transform_8, window_bounds = array<i64: 1, 32>}, {pipeline_mode = #tpu.pipeline_mode<synchronous>, transform_indices = @transform_9, window_bounds = array<i64: 32, 8>}, {pipeline_mode = #tpu.pipeline_mode<synchronous>, transform_indices = @transform_10, window_bounds = array<i64: 1, 8>}, {transform_indices = @transform_11, window_bounds = array<i64: 8, 8>}]} {
    %c0 = arith.constant 0 : index
    %c0_0 = arith.constant 0 : index
    %0 = vector.load %arg1[%c0, %c0_0] : memref<8x16xf32, #tpu.memory_space<vmem>>, vector<8x16xf32>
    %1 = arith.truncf %0 : vector<8x16xf32> to vector<8x16xbf16>
    %c0_1 = arith.constant 0 : index
    %c0_2 = arith.constant 0 : index
    %2 = vector.load %arg2[%c0_1, %c0_2] : memref<16x128xbf16, #tpu.memory_space<vmem>>, vector<16x128xbf16>
    %cst = arith.constant dense<0.000000e+00> : vector<8x128xf32>
    %3 = tpu.matmul %1, %2, %cst {dimension_numbers = #tpu.dot_dimension_numbers<[1], [0], [0], [1], [0, 0, 1, 1], [], []>} : vector<8x16xbf16>, vector<16x128xbf16>, vector<8x128xf32> -> vector<8x128xf32>
    %c0_3 = arith.constant 0 : index
    %c0_4 = arith.constant 0 : index
    %4 = vector.load %arg3[%c0_3, %c0_4] : memref<1x128xf32, #tpu.memory_space<vmem>>, vector<1x128xf32>
    %5 = vector.broadcast %4 : vector<1x128xf32> to vector<8x128xf32>
    %6 = arith.addf %3, %5 : vector<8x128xf32>
    %cst_5 = arith.constant 0.000000e+00 : f32
    %7 = vector.broadcast %cst_5 : f32 to vector<8x128xf32>
    %8 = arith.maximumf %6, %7 : vector<8x128xf32>
    %9 = arith.truncf %8 : vector<8x128xf32> to vector<8x128xbf16>
    %c0_6 = arith.constant 0 : index
    %c0_7 = arith.constant 0 : index
    %10 = vector.load %arg4[%c0_6, %c0_7] : memref<128x64xbf16, #tpu.memory_space<vmem>>, vector<128x64xbf16>
    %cst_8 = arith.constant dense<0.000000e+00> : vector<8x64xf32>
    %11 = tpu.matmul %9, %10, %cst_8 {dimension_numbers = #tpu.dot_dimension_numbers<[1], [0], [0], [1], [0, 0, 1, 1], [], []>} : vector<8x128xbf16>, vector<128x64xbf16>, vector<8x64xf32> -> vector<8x64xf32>
    %c0_9 = arith.constant 0 : index
    %c0_10 = arith.constant 0 : index
    %12 = vector.load %arg5[%c0_9, %c0_10] : memref<1x64xf32, #tpu.memory_space<vmem>>, vector<1x64xf32>
    %13 = vector.broadcast %12 : vector<1x64xf32> to vector<8x64xf32>
    %14 = arith.addf %11, %13 : vector<8x64xf32>
    %cst_11 = arith.constant 0.000000e+00 : f32
    %15 = vector.broadcast %cst_11 : f32 to vector<8x64xf32>
    %16 = arith.maximumf %14, %15 : vector<8x64xf32>
    %17 = arith.truncf %16 : vector<8x64xf32> to vector<8x64xbf16>
    %c0_12 = arith.constant 0 : index
    %c0_13 = arith.constant 0 : index
    %18 = vector.load %arg6[%c0_12, %c0_13] : memref<64x32xbf16, #tpu.memory_space<vmem>>, vector<64x32xbf16>
    %cst_14 = arith.constant dense<0.000000e+00> : vector<8x32xf32>
    %19 = tpu.matmul %17, %18, %cst_14 {dimension_numbers = #tpu.dot_dimension_numbers<[1], [0], [0], [1], [0, 0, 1, 1], [], []>} : vector<8x64xbf16>, vector<64x32xbf16>, vector<8x32xf32> -> vector<8x32xf32>
    %c0_15 = arith.constant 0 : index
    %c0_16 = arith.constant 0 : index
    %20 = vector.load %arg7[%c0_15, %c0_16] : memref<1x32xf32, #tpu.memory_space<vmem>>, vector<1x32xf32>
    %21 = vector.broadcast %20 : vector<1x32xf32> to vector<8x32xf32>
    %22 = arith.addf %19, %21 : vector<8x32xf32>
    %cst_17 = arith.constant 0.000000e+00 : f32
    %23 = vector.broadcast %cst_17 : f32 to vector<8x32xf32>
    %24 = arith.maximumf %22, %23 : vector<8x32xf32>
    %25 = arith.truncf %24 : vector<8x32xf32> to vector<8x32xbf16>
    %c0_18 = arith.constant 0 : index
    %c0_19 = arith.constant 0 : index
    %26 = vector.load %arg8[%c0_18, %c0_19] : memref<32x32xbf16, #tpu.memory_space<vmem>>, vector<32x32xbf16>
    %cst_20 = arith.constant dense<0.000000e+00> : vector<8x32xf32>
    %27 = tpu.matmul %25, %26, %cst_20 {dimension_numbers = #tpu.dot_dimension_numbers<[1], [0], [0], [1], [0, 0, 1, 1], [], []>} : vector<8x32xbf16>, vector<32x32xbf16>, vector<8x32xf32> -> vector<8x32xf32>
    %c0_21 = arith.constant 0 : index
    %c0_22 = arith.constant 0 : index
    %28 = vector.load %arg9[%c0_21, %c0_22] : memref<1x32xf32, #tpu.memory_space<vmem>>, vector<1x32xf32>
    %29 = vector.broadcast %28 : vector<1x32xf32> to vector<8x32xf32>
    %30 = arith.addf %27, %29 : vector<8x32xf32>
    %cst_23 = arith.constant 0.000000e+00 : f32
    %31 = vector.broadcast %cst_23 : f32 to vector<8x32xf32>
    %32 = arith.maximumf %30, %31 : vector<8x32xf32>
    %33 = arith.truncf %32 : vector<8x32xf32> to vector<8x32xbf16>
    %c0_24 = arith.constant 0 : index
    %c0_25 = arith.constant 0 : index
    %34 = vector.load %arg10[%c0_24, %c0_25] : memref<32x8xbf16, #tpu.memory_space<vmem>>, vector<32x8xbf16>
    %cst_26 = arith.constant dense<0.000000e+00> : vector<8x8xf32>
    %35 = tpu.matmul %33, %34, %cst_26 {dimension_numbers = #tpu.dot_dimension_numbers<[1], [0], [0], [1], [0, 0, 1, 1], [], []>} : vector<8x32xbf16>, vector<32x8xbf16>, vector<8x8xf32> -> vector<8x8xf32>
    %c0_27 = arith.constant 0 : index
    %c0_28 = arith.constant 0 : index
    %36 = vector.load %arg11[%c0_27, %c0_28] : memref<1x8xf32, #tpu.memory_space<vmem>>, vector<1x8xf32>
    %37 = vector.broadcast %36 : vector<1x8xf32> to vector<8x8xf32>
    %38 = arith.addf %35, %37 : vector<8x8xf32>
    %c0_29 = arith.constant 0 : index
    %c0_30 = arith.constant 0 : index
    %39 = vector.load %arg12[%c0_29, %c0_30] : memref<8x8xf32, #tpu.memory_space<vmem>>, vector<8x8xf32>
    tpu.vector_store %arg12[%c0_29, %c0_30], %38 {strides = array<i32>} : memref<8x8xf32, #tpu.memory_space<vmem>>, vector<8x8xf32>,
    return
  }
  func.func @transform_0(%arg0: i32) -> (i32, i32) {
    %c0_i32 = arith.constant 0 : i32
    %c0_i32_0 = arith.constant 0 : i32
    return %arg0, %c0_i32 : i32, i32
  }
  func.func @transform_1(%arg0: i32) -> (i32, i32) {
    %c0_i32 = arith.constant 0 : i32
    %c0_i32_0 = arith.constant 0 : i32
    %c0_i32_1 = arith.constant 0 : i32
    return %c0_i32, %c0_i32_0 : i32, i32
  }
  func.func @transform_2(%arg0: i32) -> (i32, i32) {
    %c0_i32 = arith.constant 0 : i32
    %c0_i32_0 = arith.constant 0 : i32
    %c0_i32_1 = arith.constant 0 : i32
    return %c0_i32, %c0_i32_0 : i32, i32
  }
  func.func @transform_3(%arg0: i32) -> (i32, i32) {
    %c0_i32 = arith.constant 0 : i32
    %c0_i32_0 = arith.constant 0 : i32
    %c0_i32_1 = arith.constant 0 : i32
    return %c0_i32, %c0_i32_0 : i32, i32
  }
  func.func @transform_4(%arg0: i32) -> (i32, i32) {
    %c0_i32 = arith.constant 0 : i32
    %c0_i32_0 = arith.constant 0 : i32
    %c0_i32_1 = arith.constant 0 : i32
    return %c0_i32, %c0_i32_0 : i32, i32
  }
  func.func @transform_5(%arg0: i32) -> (i32, i32) {
    %c0_i32 = arith.constant 0 : i32
    %c0_i32_0 = arith.constant 0 : i32
    %c0_i32_1 = arith.constant 0 : i32
    return %c0_i32, %c0_i32_0 : i32, i32
  }
  func.func @transform_6(%arg0: i32) -> (i32, i32) {
    %c0_i32 = arith.constant 0 : i32
    %c0_i32_0 = arith.constant 0 : i32
    %c0_i32_1 = arith.constant 0 : i32
    return %c0_i32, %c0_i32_0 : i32, i32
  }
  func.func @transform_7(%arg0: i32) -> (i32, i32) {
    %c0_i32 = arith.constant 0 : i32
    %c0_i32_0 = arith.constant 0 : i32
    %c0_i32_1 = arith.constant 0 : i32
    return %c0_i32, %c0_i32_0 : i32, i32
  }
  func.func @transform_8(%arg0: i32) -> (i32, i32) {
    %c0_i32 = arith.constant 0 : i32
    %c0_i32_0 = arith.constant 0 : i32
    %c0_i32_1 = arith.constant 0 : i32
    return %c0_i32, %c0_i32_0 : i32, i32
  }
  func.func @transform_9(%arg0: i32) -> (i32, i32) {
    %c0_i32 = arith.constant 0 : i32
    %c0_i32_0 = arith.constant 0 : i32
    %c0_i32_1 = arith.constant 0 : i32
    return %c0_i32, %c0_i32_0 : i32, i32
  }
  func.func @transform_10(%arg0: i32) -> (i32, i32) {
    %c0_i32 = arith.constant 0 : i32
    %c0_i32_0 = arith.constant 0 : i32
    %c0_i32_1 = arith.constant 0 : i32
    return %c0_i32, %c0_i32_0 : i32, i32
  }
  func.func @transform_11(%arg0: i32) -> (i32, i32) {
    %c0_i32 = arith.constant 0 : i32
    %c0_i32_0 = arith.constant 0 : i32
    return %arg0, %c0_i32 : i32, i32
  }
}

</mosaic_0001>

<bundles_post_ra>
// kernel: tpu_custom_call.1
= control target key start
LH: loop header
LB: loop body
LE: loop exit
PB: predicated region body
PF: predicated region fallthrough
CT: control target
= control target key end

     0   :  { %vm54_vm0 = vcmask 130048   ;;  %s558_s0 = inlined_call_operand.vmem [shape: f32[8,16], index: 0, kind: input, shape index: {}]   ;;  %s559_s1 = inlined_call_operand.vmem [shape: bf16[16,128], index: 1, kind: input, shape index: {}]   ;;  %s560_s2 = inlined_call_operand.vmem [shape: f32[1,128], index: 2, kind: input, shape index: {}]   ;;  %s561_s3 = inlined_call_operand.vmem [shape: bf16[128,64], index: 3, kind: input, shape index: {}]   ;;  %s562_s4 = inlined_call_operand.vmem [shape: f32[1,64], index: 4, kind: input, shape index: {}]   ;;  %s563_s5 = inlined_call_operand.vmem [shape: bf16[64,32], index: 5, kind: input, shape index: {}]   ;;  %s564_s6 = inlined_call_operand.vmem [shape: f32[1,32], index: 6, kind: input, shape index: {}]   ;;  %s565_s7 = inlined_call_operand.vmem [shape: bf16[32,32], index: 7, kind: input, shape index: {}]   ;;  %s566_s8 = inlined_call_operand.vmem [shape: f32[1,32], index: 8, kind: input, shape index: {}]   ;;  %s567_s9 = inlined_call_operand.vmem [shape: bf16[32,8], index: 9, kind: input, shape index: {}]   ;;  %s568_s10 = inlined_call_operand.vmem [shape: f32[1,8], index: 10, kind: input, shape index: {}]   ;;  %s569_s11 = inlined_call_operand.hbm [shape: f32[8,8], index: 11, kind: output, shape index: {}]  }
   0x1   :  { %v376_v0 = vld [vmem:[%s559_s1] sm:$0xff]  ;;  %v384_v2 = vld [vmem:[%s561_s3 + $0x38] sm:$0xff]  ;;  %v383_v4 = vld [vmem:[%s561_s3 + $0x30] sm:$0xff] }
   0x2   :  { %v40_v1 = vld [vmem:[%s558_s0] sm:$0xff]  ;;  %65 = vmatpush.bf16.msra.mxu0 %v376_v0  ;;  %141 = vmatpush.bf16.msra.mxu1 %v384_v2 }
   0x3   :  { %v41_v3 = vpack.c.bf16 %v40_v1, %v40_v1 }
   0x4   :  { %16 = vsyncpa [#allocation3], 0  ;;  %v382_v5 = vld [vmem:[%s561_s3 + $0x28] sm:$0xff]  ;;  %v381_v6 = vld [vmem:[%s561_s3 + $0x20] sm:$0xff]  ;;  %vm192_vm1 = vcmask 523264   ;;  %vm231_vm2 = vcmask 261120  }
   0x5   :  { %308 = vmatmul.msk.bf16.vlgmr.msra.gmra.mxu0 %vm54_vm0, %v41_v3  ;;  %v380_v7 = vld [vmem:[%s561_s3 + $0x18] sm:$0xff]  ;;  %v379_v8 = vld [vmem:[%s561_s3 + $0x10] sm:$0xff]  ;;  %v378_v9 = vld [vmem:[%s561_s3 + $0x8] sm:$0xff]  ;;  %s295_s18 = sshll.u32 %s569_s11, 4  ;;  %vm286_vm3 = vcmask 64512   ;;  %s296_s18 = int_to_ptr.hbm [resolvable:$true] %s295_s18 }
   0x6   :  { %142 = vmatpush.bf16.msra.mxu1 %v383_v4  ;;  %v377_v10 = vld [vmem:[%s561_s3] sm:$0xff]  ;;  %v388_v11 = vld [vmem:[%s563_s5 + $0x18] sm:$0xff]  ;;  %v387_v12 = vld [vmem:[%s563_s5 + $0x10] sm:$0xff] }
   0x7   :  { %200 = vmatpush.bf16.msra.mxu2 %v388_v11  ;;  %v394_v13 = vld [vmem:[%s560_s2] ss:$0 sm:$0xff]  ;;  %v386_v19 = vld [vmem:[%s563_s5 + $0x8] sm:$0xff] }
   0x8   :  { %v385_v20 = vld [vmem:[%s563_s5] sm:$0xff]  ;;  %v390_v27 = vld [vmem:[%s565_s7 + $0x8] sm:$0xff] }
   0x9   :  { %v395_v21 = vld [vmem:[%s562_s4] ss:$0 sm:$0xff]  ;;  %241 = vmatpush.bf16.msra.mxu3 %v390_v27  ;;  %v392_v29 = vld [vmem:[%s567_s9 + $0x8] sm:$0xff] }
   0xa   :  { %143 = vmatpush.bf16.msra.mxu1 %v382_v5  ;;  %v389_v28 = vld [vmem:[%s565_s7] sm:$0xff]  ;;  %279 = vmatpush.bf16.msrb.mxu0 %v392_v29 }
   0xb   :  { %201 = vmatpush.bf16.msra.mxu2 %v387_v12  ;;  %v391_v30 = vld [vmem:[%s567_s9] sm:$0xff] }
   0xc   :  { %v396_v31 = vld [vmem:[%s564_s6] ss:$0 sm:$0xff]  ;;  %s425_s6 = smov [#allocation2]  }
   0xd   :  { %242 = vmatpush.bf16.msra.mxu3 %v389_v28  ;;  %v397_v37 = vld [vmem:[%s566_s8] ss:$0 sm:$0xff]  ;;  %s293_s15 = sshll.u32 %s425_s6, 4  ;;  %s294_s15 = int_to_ptr.vmem [resolvable:$true] %s293_s15 }
   0xe   :  { %144 = vmatpush.bf16.msra.mxu1 %v381_v6  ;;  %280 = vmatpush.bf16.msrb.mxu0 %v391_v30  ;;  %v398_v43 = vld [vmem:[%s568_s10] ss:$0 sm:$0xff] }
   0xf   :  { %202 = vmatpush.bf16.msra.mxu2 %v386_v19 }
  0x12   :  { %145 = vmatpush.bf16.msra.mxu1 %v380_v7 }
  0x13   :  { %203 = vmatpush.bf16.msra.mxu2 %v385_v20 }
  0x16   :  { %146 = vmatpush.bf16.msra.mxu1 %v379_v8 }
  0x1a   :  { %147 = vmatpush.bf16.msra.mxu1 %v378_v9 }
  0x1e   :  { %148 = vmatpush.bf16.msra.mxu1 %v377_v10 }
  0x82   :  { %v67_v14 = vpop.f32.mrf.mxu0 }
  0x83   :  { %v68_v15 = vadd.f32 %v394_v13, %v67_v14 }
  0x85   :  { %v71_v16 = vmax.f32 %v68_v15, 0.0 }
  0x87   :  { %v72_v17 = vpack.c.bf16 %v71_v16, %v71_v16 }
  0x89   :  { %149 = vmatmul.bf16.vlgmr.msra.gmra.mxu1 %v72_v17 }
  0x8a   :  { %v69_v18 = vpop.f32.mrf.mxu0 }
 0x106   :  { %v150_v22 = vpop.f32.mrf.mxu1 }
 0x107   :  { %v151_v23 = vadd.f32 %v395_v21, %v150_v22 }
 0x109   :  { %v154_v24 = vmax.f32 %v151_v23, 0.0 }
 0x10b   :  { %v155_v25 = vpack.c.bf16 %v154_v24, %v154_v24 }
 0x10d   :  { %357 = vmatmul.msk.bf16.vlgmr.msra.gmra.mxu2 %vm192_vm1, %v155_v25 }
 0x10e   :  { %v152_v26 = vpop.f32.mrf.mxu1 }
 0x190   :  { %v205_v32 = vpop.f32.mrf.mxu2 }
 0x191   :  { %v206_v33 = vadd.f32 %v396_v31, %v205_v32 }
 0x193   :  { %v209_v34 = vmax.f32 %v206_v33, 0.0 }
 0x195   :  { %v210_v35 = vpack.c.bf16 %v209_v34, %v209_v34 }
 0x197   :  { %366 = vmatmul.msk.bf16.vlgmr.msra.gmra.mxu3 %vm231_vm2, %v210_v35 }
 0x198   :  { %v207_v36 = vpop.f32.mrf.mxu2 }
 0x21a   :  { %v244_v38 = vpop.f32.mrf.mxu3 }
 0x21b   :  { %v245_v39 = vadd.f32 %v397_v37, %v244_v38 }
 0x21d   :  { %v248_v40 = vmax.f32 %v245_v39, 0.0 }
 0x21f   :  { %v249_v41 = vpack.c.bf16 %v248_v40, %v248_v40 }
 0x221   :  { %375 = vmatmul.msk.bf16.vlgmr.msrb.gmra.mxu0 %vm231_vm2, %v249_v41 }
 0x222   :  { %v246_v42 = vpop.f32.mrf.mxu3 }
 0x29e   :  { %v282_v44 = vpop.f32.mrf.mxu0 }
 0x29f   :  { %v283_v45 = vadd.f32 %v398_v43, %v282_v44 }
 0x2a1   :  { %287 = vst.msk [vmem:[#allocation2] sm:$0xff] %vm286_vm3, %v283_v45 }
 0x2a2   :  { %298 = dma.vmem_to_hbm [thread:$0]  %s294_s15, 128, %s296_s18, [#allocation3]  }
 0x2a6   :  { %v284_v46 = vpop.f32.mrf.mxu0 }
 0x2a7   :  { %423 = dma.done.wait [#allocation3], 128  }
 0x2a8   :  { %424 = vsyncadd [#allocation3], 4294967168 }
 0x2a9   :  { %303 = vsyncpa [#allocation3], 1 }

</bundles_post_ra>
